<compile_context>
chip_gen: v5e
topology: v5e:2x2
jax: 0.10.0
libtpu: 0.0.40
codegen_flags: <defaults>
</compile_context>

<pallas_src>
import math

import jax
import jax.numpy as jnp
from jax import lax
from jax.experimental import pallas as pl
from jax.experimental.pallas import tpu as pltpu


def _default_compute_dtype():
    """bf16 MXU operands on v6e/v7x; f32 on v5e and older (no bf16 VPU/EUP there)."""
    try:
        kind = jax.devices()[0].device_kind.lower()
    except Exception:
        kind = ""
    if ("v6" in kind) or ("v7" in kind):
        return jnp.bfloat16
    return jnp.float32


def _default_vmem_limit():
    """~3/4 of this generation's VMEM (v5e/v6e: 128 MiB -> 96; v7x: 64 MiB -> 48)."""
    try:
        cap = getattr(pltpu.get_tpu_info(), "vmem_capacity_bytes", None)
        if cap:
            return int(cap) * 3 // 4
    except Exception:
        pass
    return 32 * 1024 * 1024


def make_tlayer_kernel(n_heads, hid_dim, batch_block, seq_len, d_model,
                       n_ff_blocks, key_block, compute_dtype):
    H, hd, Bt, S, D = n_heads, hid_dim, batch_block, seq_len, d_model
    KB = key_block
    n_kb = S // KB
    NF = n_ff_blocks
    inv_sqrt_dk = 1.0 / math.sqrt(hd)
    cdt = compute_dtype

    def kernel(src_ref, wq_ref, wk_ref, wv_ref, wo_ref, battn_ref,
               w1_ref, b1_ref, w2t_ref, b2t_ref, out_ref, n1_scr):
        f = pl.program_id(1)   # dimff-block axis (last, "arbitrary")

        # ---------- attention + residual: once per batch block, cached in VMEM ----------
        @pl.when(f == 0)
        def _attention():
            xf = src_ref[...]                     # (Bt*S, D) f32 (flattened batch*seq)
            xc = xf.astype(cdt)

            # Additive key-0 mask for the FIRST key chunk only (key index 0 lives there).
            # Kept in f32; -1e30 (not -inf) so S == 1 does not NaN and bf16 never sees it.
            col0 = lax.broadcasted_iota(jnp.int32, (S, KB), 1)
            mask0 = jnp.where(col0 == 0, jnp.float32(-1e30), jnp.float32(0.0))

            attn_acc = jnp.zeros((Bt * S, D), jnp.float32)
            for h in range(H):                    # static; wq_ref[h] is a leading-axis
                                                  # VMEM offset -> no lane slicing/concat
                q = jnp.dot(xc, wq_ref[h],
                            preferred_element_type=jnp.float32).reshape(Bt, S, hd).astype(cdt)
                k = jnp.dot(xc, wk_ref[h],
                            preferred_element_type=jnp.float32).reshape(Bt, S, hd).astype(cdt)
                xv = jnp.dot(xc, wv_ref[h],
                             preferred_element_type=jnp.float32).reshape(Bt, S, hd).astype(cdt)

                # Online softmax over key chunks (never materialises (Bt, S, S) f32).
                m = l = acc = None
                for c in range(n_kb):             # static; chunk slices are tile-aligned
                    kc = k[:, c * KB:(c + 1) * KB, :]
                    vc = xv[:, c * KB:(c + 1) * KB, :]
                    # logits[b,q,k] = sum_e q[b,q,e]*kc[b,k,e]  (no .T, MXU-native)
                    s_blk = lax.dot_general(
                        q, kc, dimension_numbers=(((2,), (2,)), ((0,), (0,))),
                        preferred_element_type=jnp.float32) * inv_sqrt_dk   # (Bt,S,KB)
                    if c == 0:
                        s_blk = s_blk + mask0
                        m = jnp.max(s_blk, axis=-1, keepdims=True)
                        p = jnp.exp(s_blk - m)
                        l = jnp.sum(p, axis=-1, keepdims=True)
                        acc = lax.dot_general(
                            p.astype(cdt), vc,
                            dimension_numbers=(((2,), (1,)), ((0,), (0,))),
                            preferred_element_type=jnp.float32)             # (Bt,S,hd)
                    else:
                        m_new = jnp.maximum(m, jnp.max(s_blk, axis=-1, keepdims=True))
                        alpha = jnp.exp(m - m_new)
                        p = jnp.exp(s_blk - m_new)
                        l = alpha * l + jnp.sum(p, axis=-1, keepdims=True)
                        acc = alpha * acc + lax.dot_general(
                            p.astype(cdt), vc,
                            dimension_numbers=(((2,), (1,)), ((0,), (0,))),
                            preferred_element_type=jnp.float32)
                        m = m_new

                # normalise with the EUP reciprocal (approx, separate issue slot)
                attended = acc * pl.reciprocal(l, approx=True)              # (Bt,S,hd)
                attn_acc = attn_acc + jnp.dot(
                    attended.reshape(Bt * S, hd).astype(cdt), wo_ref[h],
                    preferred_element_type=jnp.float32)                     # (Bt*S, D)

            # residuals: MHA adds src once, TLayerSpec adds it again -> 2*src.
            # battn = sum_h (bV_h @ Wo_h + bO_h), folded host-side into one (1, D) row.
            n1_scr[...] = 2.0 * xf + attn_acc + battn_ref[...]

        # ---------- MLP, tiled over dimff (second grid axis) ----------
        n1c = n1_scr[...].astype(cdt)                                       # (Bt*S, D)
        h1 = jnp.dot(n1c, w1_ref[...],
                     preferred_element_type=jnp.float32) + b1_ref[...]      # (Bt*S, FB)
        h1 = jnp.maximum(h1, 0.0)

        # lane-dense partial output: out^T[d_out, Bt*S] = W2_blk^T contracted over dimff
        part = lax.dot_general(
            w2t_ref[...], h1.astype(cdt),
            dimension_numbers=(((1,), (1,)), ((), ())),
            preferred_element_type=jnp.float32)                             # (d_out, Bt*S)

        @pl.when(f == 0)
        def _init_out():
            out_ref[...] = jnp.zeros_like(out_ref)

        out_ref[0] = out_ref[0] + part

        @pl.when(f == NF - 1)
        def _finalize():
            out_ref[0] = (out_ref[0] + b2t_ref[...]).astype(out_ref.dtype)

    return kernel


def tlayer_spec_forward(src, params, *, n_heads, hid_dim, dimff, d_out,
                        batch_block=None, dimff_block=None, key_block=None,
                        compute_dtype=None, vmem_limit_bytes=None, src_buffers=2):
    """Pallas TPU implementation of TLayerSpec.forward."""
    B, S, D = src.shape
    wq, wk, wv, bv, wo, bo, w1, b1, w2, b2 = params
    H, hd = n_heads, hid_dim

    cdt = compute_dtype if compute_dtype is not None else _default_compute_dtype()
    vmem_limit = (vmem_limit_bytes if vmem_limit_bytes is not None
                  else _default_vmem_limit())

    # Batch block: >= 2 grid steps when possible so the "parallel" axis can use both
    # v7x TensorCores; keep Bt*S a multiple of 8 sublanes (or the whole batch).
    if batch_block is None:
        batch_block = B
        if B % 2 == 0 and ((B // 2) * S) % 8 == 0:
            batch_block = B // 2
    Bt = batch_block
    assert B % Bt == 0, "batch_block must divide the batch size"
    assert Bt == B or (Bt * S) % 8 == 0, "block rows must fill the 8-sublane tiling"

    # dimff tiling (W1/b1/W2^T pipelined per block, output accumulated in place).
    if dimff_block is None:
        dimff_block = dimff if dimff <= 1024 else 512
    FB = dimff_block
    assert dimff % FB == 0
    assert FB == dimff or FB % 128 == 0, "dimff block must be lane-aligned"
    NF = dimff // FB

    # key chunking for the online softmax.
    if key_block is None:
        key_block = S if S <= 512 else 512
    KB = key_block
    assert S % KB == 0
    assert KB == S or KB % 8 == 0, "key block must be sublane-aligned"

    grid = (B // Bt, NF)

    # Head-major weight stacks; per-head leading-axis ref indexing in the kernel.
    wq_s = wq.astype(cdt)                                   # (H, D, hd)
    wk_s = wk.astype(cdt)
    wv_s = wv.astype(cdt)
    wo_s = wo.astype(cdt)                                   # (H, hd, D)
    # Fold V/O biases through Wo host-side: sum_h (bV_h @ Wo_h + bO_h)  -> one (1, D) row.
    battn = (jnp.einsum('hij,hjk->ik', bv, wo)
             + jnp.sum(bo, axis=0)).reshape(1, D).astype(jnp.float32)
    w1_c = w1.astype(cdt)                                   # (D, dimff)
    b1_f = b1.reshape(1, dimff).astype(jnp.float32)
    w2t_c = jnp.transpose(w2).astype(cdt)                   # (d_out, dimff)
    b2t_f = b2.reshape(d_out, 1).astype(jnp.float32)        # (d_out, 1)

    # Flatten (B, S, D) -> (B*S, D): projections/MLP see dense sublanes.
    src2 = src.reshape(B * S, D)

    kernel = make_tlayer_kernel(H, hd, Bt, S, D, NF, KB, cdt)

    # Attention weights / folded biases: whole-array single-buffered VMEM residents.
    resident = pl.BlockSpec(memory_space=pltpu.MemorySpace.VMEM)

    src_kwargs = {}
    if src_buffers > 2:
        # only useful once the grid has several batch steps and the src DMA is exposed
        src_kwargs = dict(pipeline_mode=pl.Buffered(src_buffers))
    src_spec = pl.BlockSpec((Bt * S, D), lambda b, f: (b, 0), **src_kwargs)

    out3 = pl.pallas_call(
        kernel,
        out_shape=jax.ShapeDtypeStruct((B // Bt, d_out, Bt * S), jnp.float32),
        grid_spec=pltpu.PrefetchScalarGridSpec(
            num_scalar_prefetch=0,
            grid=grid,
            in_specs=[
                src_spec,                                     # src rows (batch-blocked)
                resident, resident, resident, resident,       # Wq, Wk, Wv, Wo (head-major)
                resident,                                     # battn (1, D)
                pl.BlockSpec((D, FB), lambda b, f: (0, f)),   # W1 dimff block
                pl.BlockSpec((1, FB), lambda b, f: (0, f)),   # b1 dimff block
                pl.BlockSpec((d_out, FB), lambda b, f: (0, f)),  # W2^T dimff block
                resident,                                     # b2^T (d_out, 1)
            ],
            # lane-dense output slab: last dim = Bt*S rows (full extent of that axis)
            out_specs=pl.BlockSpec((1, d_out, Bt * S), lambda b, f: (b, 0, 0)),
            scratch_shapes=[pltpu.VMEM((Bt * S, D), jnp.float32)],   # cached n1
        ),
        compiler_params=pltpu.CompilerParams(
            dimension_semantics=("parallel", "arbitrary"),
            vmem_limit_bytes=vmem_limit),
    )(src2, wq_s, wk_s, wv_s, wo_s, battn, w1_c, b1_f, w2t_c, b2t_f)

    # (G, d_out, Bt*S) -> (B, S, d_out)   (plain XLA relayout in the wrapper)
    out = out3.reshape(B // Bt, d_out, Bt, S)
    out = jnp.transpose(out, (0, 2, 3, 1)).reshape(B, S, d_out)
    return out


def tlayer_spec_reference(src, params, *, hid_dim):
    """Pure-JAX reference mirroring the PyTorch module (original op order)."""
    wq, wk, wv, bv, wo, bo, w1, b1, w2, b2 = params
    n_heads = wq.shape[0]
    acc = jnp.zeros_like(src)
    for h in range(n_heads):
        q = src @ wq[h]
        k = src @ wk[h]
        logits = (q @ jnp.swapaxes(k, 1, 2)) / math.sqrt(hid_dim)
        logits = logits.at[:, :, 0].set(-jnp.inf)
        att = jax.nn.softmax(logits, axis=2)
        att_out = att @ src
        v = att_out @ wv[h] + bv[h]
        acc = acc + (v @ wo[h] + bo[h])
    mha_out = src + acc
    n1 = src + mha_out
    h1 = jnp.maximum(n1 @ w1 + b1, 0.0)
    return h1 @ w2 + b2


if __name__ == "__main__":
    # Module hyper-parameters (matching TLayerSpec defaults)
    d_model, n_heads, hid_dim, dimff, d_out = 4, 1, 1, 8, 1
    B, S = 2, 8

    key = jax.random.PRNGKey(0)
    ks = jax.random.split(key, 12)

    def init(k, shape, fan_in):
        bound = 1.0 / math.sqrt(fan_in)
        return jax.random.uniform(k, shape, jnp.float32, -bound, bound)

    # Weights stored pre-transposed ((in, out) layout) so the kernel does x @ W.
    wq = init(ks[0], (n_heads, d_model, hid_dim), d_model)   # Q (no bias)
    wk = init(ks[1], (n_heads, d_model, hid_dim), d_model)   # K (no bias)
    wv = init(ks[2], (n_heads, d_model, hid_dim), d_model)   # V weight
    bv = init(ks[3], (n_heads, 1, hid_dim), d_model)         # V bias
    wo = init(ks[4], (n_heads, hid_dim, d_model), hid_dim)   # O weight
    bo = init(ks[5], (n_heads, 1, d_model), hid_dim)         # O bias
    w1 = init(ks[6], (d_model, dimff), d_model)              # MLP layer 1 weight
    b1 = init(ks[7], (1, dimff), d_model)                    # MLP layer 1 bias
    w2 = init(ks[8], (dimff, d_out), dimff)                  # MLP layer 2 weight
    b2 = init(ks[9], (1, d_out), dimff)                      # MLP layer 2 bias
    params = (wq, wk, wv, bv, wo, bo, w1, b1, w2, b2)

    src = jax.random.normal(ks[10], (B, S, d_model), jnp.float32)

    ref = tlayer_spec_reference(src, params, hid_dim=hid_dim)

    # f32 operand (debug) path: tight check.  Slack covers the reassociated value/bias
    # path and the approximate (EUP) softmax reciprocal.
    out_f32 = tlayer_spec_forward(src, params, n_heads=n_heads, hid_dim=hid_dim,
                                  dimff=dimff, d_out=d_out,
                                  compute_dtype=jnp.float32)
    out_f32 = jax.block_until_ready(out_f32)
    assert out_f32.shape == (B, S, d_out), out_f32.shape
    assert jnp.allclose(out_f32, ref, atol=5e-3, rtol=5e-3), (out_f32, ref)

    # Explicit bf16 operand path (v6e/v7x MXU; softmax/accumulation stay f32).
    out_bf16 = tlayer_spec_forward(src, params, n_heads=n_heads, hid_dim=hid_dim,
                                   dimff=dimff, d_out=d_out,
                                   compute_dtype=jnp.bfloat16)
    out_bf16 = jax.block_until_ready(out_bf16)
    assert jnp.allclose(out_bf16, ref, atol=1e-1, rtol=1e-1), (out_bf16, ref)

    # Auto-selected compute dtype (bf16 on v6e/v7x, f32 on v5e/older).
    out_auto = tlayer_spec_forward(src, params, n_heads=n_heads, hid_dim=hid_dim,
                                   dimff=dimff, d_out=d_out)
    out_auto = jax.block_until_ready(out_auto)
    assert jnp.allclose(out_auto, ref, atol=1e-1, rtol=1e-1), (out_auto, ref)

    print("KERNEL_OK")
</pallas_src>

<mosaic_0001>
module attributes {stable_mosaic.version = 11 : i64} {
  func.func @kernel(%arg0: i32, %arg1: i32, %arg2: memref<8x4xf32, #tpu.memory_space<vmem>>, %arg3: memref<1x4x1xf32, #tpu.memory_space<vmem>>, %arg4: memref<1x4x1xf32, #tpu.memory_space<vmem>>, %arg5: memref<1x4x1xf32, #tpu.memory_space<vmem>>, %arg6: memref<1x1x4xf32, #tpu.memory_space<vmem>>, %arg7: memref<1x4xf32, #tpu.memory_space<vmem>>, %arg8: memref<4x8xf32, #tpu.memory_space<vmem>>, %arg9: memref<1x8xf32, #tpu.memory_space<vmem>>, %arg10: memref<1x8xf32, #tpu.memory_space<vmem>>, %arg11: memref<1x1xf32, #tpu.memory_space<vmem>>, %arg12: memref<1x1x8xf32, #tpu.memory_space<vmem>>, %arg13: memref<8x4xf32, #tpu.memory_space<vmem>>) attributes {dimension_semantics = [#tpu.dimension_semantics<parallel>, #tpu.dimension_semantics<arbitrary>], iteration_bounds = array<i64: 2, 1>, scalar_prefetch = 0 : i64, scratch_operands = 1 : i64, tpu.core_type = #tpu.core_type<tc>, window_params = [{transform_indices = @transform_0, window_bounds = array<i64: 8, 4>}, {pipeline_mode = #tpu.pipeline_mode<synchronous>, transform_indices = @transform_1, window_bounds = array<i64: 1, 4, 1>}, {pipeline_mode = #tpu.pipeline_mode<synchronous>, transform_indices = @transform_2, window_bounds = array<i64: 1, 4, 1>}, {pipeline_mode = #tpu.pipeline_mode<synchronous>, transform_indices = @transform_3, window_bounds = array<i64: 1, 4, 1>}, {pipeline_mode = #tpu.pipeline_mode<synchronous>, transform_indices = @transform_4, window_bounds = array<i64: 1, 1, 4>}, {pipeline_mode = #tpu.pipeline_mode<synchronous>, transform_indices = @transform_5, window_bounds = array<i64: 1, 4>}, {transform_indices = @transform_6, window_bounds = array<i64: 4, 8>}, {transform_indices = @transform_7, window_bounds = array<i64: 1, 8>}, {transform_indices = @transform_8, window_bounds = array<i64: 1, 8>}, {pipeline_mode = #tpu.pipeline_mode<synchronous>, transform_indices = @transform_9, window_bounds = array<i64: 1, 1>}, {transform_indices = @transform_10, window_bounds = array<i64: 1, 1, 8>}]} {
    %c0_i32 = arith.constant 0 : i32
    %0 = arith.cmpi eq, %arg1, %c0_i32 : i32
    %1 = arith.extui %0 : i1 to i32
    %c0_i32_0 = arith.constant 0 : i32
    %2 = arith.cmpi ne, %1, %c0_i32_0 : i32
    scf.if %2 {
      %c0_20 = arith.constant 0 : index
      %c0_21 = arith.constant 0 : index
      %25 = vector.load %arg2[%c0_20, %c0_21] : memref<8x4xf32, #tpu.memory_space<vmem>>, vector<8x4xf32>
      %26 = tpu.iota {dimensions = array<i32: 1>} : vector<8x8xi32>
      %c0_i32_22 = arith.constant 0 : i32
      %27 = vector.broadcast %c0_i32_22 : i32 to vector<8x8xi32>
      %28 = arith.cmpi eq, %26, %27 : vector<8x8xi32>
      %cst_23 = arith.constant -1.000000e+30 : f32
      %cst_24 = arith.constant 0.000000e+00 : f32
      %29 = vector.broadcast %cst_23 : f32 to vector<8x8xf32>
      %30 = vector.broadcast %cst_24 : f32 to vector<8x8xf32>
      %31 = arith.select %28, %29, %30 : vector<8x8xi1>, vector<8x8xf32>
      %cst_25 = arith.constant 0.000000e+00 : f32
      %32 = vector.broadcast %cst_25 : f32 to vector<8x4xf32>
      %c0_26 = arith.constant 0 : index
      %c0_27 = arith.constant 0 : index
      %c0_28 = arith.constant 0 : index
      %33 = vector.load %arg3[%c0_26, %c0_27, %c0_28] : memref<1x4x1xf32, #tpu.memory_space<vmem>>, vector<1x4x1xf32>
      %34 = vector.shape_cast %33 : vector<1x4x1xf32> to vector<4x1xf32>
      %cst_29 = arith.constant dense<0.000000e+00> : vector<8x1xf32>
      %35 = tpu.matmul %25, %34, %cst_29 {dimension_numbers = #tpu.dot_dimension_numbers<[1], [0], [0], [1], [0, 0, 1, 1], [], []>} : vector<8x4xf32>, vector<4x1xf32>, vector<8x1xf32> -> vector<8x1xf32>
      %36 = vector.shape_cast %35 : vector<8x1xf32> to vector<1x8x1xf32>
      %c0_30 = arith.constant 0 : index
      %c0_31 = arith.constant 0 : index
      %c0_32 = arith.constant 0 : index
      %37 = vector.load %arg4[%c0_30, %c0_31, %c0_32] : memref<1x4x1xf32, #tpu.memory_space<vmem>>, vector<1x4x1xf32>
      %38 = vector.shape_cast %37 : vector<1x4x1xf32> to vector<4x1xf32>
      %cst_33 = arith.constant dense<0.000000e+00> : vector<8x1xf32>
      %39 = tpu.matmul %25, %38, %cst_33 {dimension_numbers = #tpu.dot_dimension_numbers<[1], [0], [0], [1], [0, 0, 1, 1], [], []>} : vector<8x4xf32>, vector<4x1xf32>, vector<8x1xf32> -> vector<8x1xf32>
      %40 = vector.shape_cast %39 : vector<8x1xf32> to vector<1x8x1xf32>
      %c0_34 = arith.constant 0 : index
      %c0_35 = arith.constant 0 : index
      %c0_36 = arith.constant 0 : index
      %41 = vector.load %arg5[%c0_34, %c0_35, %c0_36] : memref<1x4x1xf32, #tpu.memory_space<vmem>>, vector<1x4x1xf32>
      %42 = vector.shape_cast %41 : vector<1x4x1xf32> to vector<4x1xf32>
      %cst_37 = arith.constant dense<0.000000e+00> : vector<8x1xf32>
      %43 = tpu.matmul %25, %42, %cst_37 {dimension_numbers = #tpu.dot_dimension_numbers<[1], [0], [0], [1], [0, 0, 1, 1], [], []>} : vector<8x4xf32>, vector<4x1xf32>, vector<8x1xf32> -> vector<8x1xf32>
      %44 = vector.shape_cast %43 : vector<8x1xf32> to vector<1x8x1xf32>
      %cst_38 = arith.constant dense<0.000000e+00> : vector<1x8x8xf32>
      %45 = tpu.matmul %36, %40, %cst_38 {dimension_numbers = #tpu.dot_dimension_numbers<[2], [2], [1], [1], [0, 0, 0, 1, 1, 1], [0], [0]>} : vector<1x8x1xf32>, vector<1x8x1xf32>, vector<1x8x8xf32> -> vector<1x8x8xf32>
      %cst_39 = arith.constant 1.000000e+00 : f32
      %46 = vector.broadcast %cst_39 : f32 to vector<1x8x8xf32>
      %47 = arith.mulf %45, %46 : vector<1x8x8xf32>
      %48 = vector.shape_cast %31 : vector<8x8xf32> to vector<1x8x8xf32>
      %49 = arith.addf %47, %48 : vector<1x8x8xf32>
      %cst_40 = arith.constant dense<0xFF800000> : vector<1x8xf32>
      %50 = vector.multi_reduction <maximumf>, %49, %cst_40 [2] : vector<1x8x8xf32> to vector<1x8xf32>
      %51 = vector.shape_cast %50 : vector<1x8xf32> to vector<1x8x1xf32>
      %52 = vector.broadcast %51 : vector<1x8x1xf32> to vector<1x8x8xf32>
      %53 = arith.subf %49, %52 : vector<1x8x8xf32>
      %54 = math.exp %53 : vector<1x8x8xf32>
      %cst_41 = arith.constant dense<0.000000e+00> : vector<1x8xf32>
      %55 = vector.multi_reduction <add>, %54, %cst_41 [2] : vector<1x8x8xf32> to vector<1x8xf32>
      %56 = vector.shape_cast %55 : vector<1x8xf32> to vector<1x8x1xf32>
      %cst_42 = arith.constant dense<0.000000e+00> : vector<1x8x1xf32>
      %57 = tpu.matmul %54, %44, %cst_42 {dimension_numbers = #tpu.dot_dimension_numbers<[2], [1], [1], [2], [0, 0, 0, 1, 1, 2], [0], [0]>} : vector<1x8x8xf32>, vector<1x8x1xf32>, vector<1x8x1xf32> -> vector<1x8x1xf32>
      %58 = tpu.reciprocal %56 {approx = true} : vector<1x8x1xf32> -> vector<1x8x1xf32>
      %59 = arith.mulf %57, %58 : vector<1x8x1xf32>
      %60 = vector.shape_cast %59 : vector<1x8x1xf32> to vector<8x1xf32>
      %c0_43 = arith.constant 0 : index
      %c0_44 = arith.constant 0 : index
      %c0_45 = arith.constant 0 : index
      %61 = vector.load %arg6[%c0_43, %c0_44, %c0_45] : memref<1x1x4xf32, #tpu.memory_space<vmem>>, vector<1x1x4xf32>
      %62 = vector.shape_cast %61 : vector<1x1x4xf32> to vector<1x4xf32>
      %cst_46 = arith.constant dense<0.000000e+00> : vector<8x4xf32>
      %63 = tpu.matmul %60, %62, %cst_46 {dimension_numbers = #tpu.dot_dimension_numbers<[1], [0], [0], [1], [0, 0, 1, 1], [], []>} : vector<8x1xf32>, vector<1x4xf32>, vector<8x4xf32> -> vector<8x4xf32>
      %64 = arith.addf %32, %63 : vector<8x4xf32>
      %cst_47 = arith.constant 2.000000e+00 : f32
      %65 = vector.broadcast %cst_47 : f32 to vector<8x4xf32>
      %66 = arith.mulf %65, %25 : vector<8x4xf32>
      %67 = arith.addf %66, %64 : vector<8x4xf32>
      %c0_48 = arith.constant 0 : index
      %c0_49 = arith.constant 0 : index
      %68 = vector.load %arg7[%c0_48, %c0_49] : memref<1x4xf32, #tpu.memory_space<vmem>>, vector<1x4xf32>
      %69 = vector.broadcast %68 : vector<1x4xf32> to vector<8x4xf32>
      %70 = arith.addf %67, %69 : vector<8x4xf32>
      %c0_50 = arith.constant 0 : index
      %c0_51 = arith.constant 0 : index
      %71 = vector.load %arg13[%c0_50, %c0_51] : memref<8x4xf32, #tpu.memory_space<vmem>>, vector<8x4xf32>
      tpu.vector_store %arg13[%c0_50, %c0_51], %70 {strides = array<i32>} : memref<8x4xf32, #tpu.memory_space<vmem>>, vector<8x4xf32>,
    } else {
    }
    %c0 = arith.constant 0 : index
    %c0_1 = arith.constant 0 : index
    %3 = vector.load %arg13[%c0, %c0_1] : memref<8x4xf32, #tpu.memory_space<vmem>>, vector<8x4xf32>
    %c0_2 = arith.constant 0 : index
    %c0_3 = arith.constant 0 : index
    %4 = vector.load %arg8[%c0_2, %c0_3] : memref<4x8xf32, #tpu.memory_space<vmem>>, vector<4x8xf32>
    %cst = arith.constant dense<0.000000e+00> : vector<8x8xf32>
    %5 = tpu.matmul %3, %4, %cst {dimension_numbers = #tpu.dot_dimension_numbers<[1], [0], [0], [1], [0, 0, 1, 1], [], []>} : vector<8x4xf32>, vector<4x8xf32>, vector<8x8xf32> -> vector<8x8xf32>
    %c0_4 = arith.constant 0 : index
    %c0_5 = arith.constant 0 : index
    %6 = vector.load %arg9[%c0_4, %c0_5] : memref<1x8xf32, #tpu.memory_space<vmem>>, vector<1x8xf32>
    %7 = vector.broadcast %6 : vector<1x8xf32> to vector<8x8xf32>
    %8 = arith.addf %5, %7 : vector<8x8xf32>
    %cst_6 = arith.constant 0.000000e+00 : f32
    %9 = vector.broadcast %cst_6 : f32 to vector<8x8xf32>
    %10 = arith.maximumf %8, %9 : vector<8x8xf32>
    %c0_7 = arith.constant 0 : index
    %c0_8 = arith.constant 0 : index
    %11 = vector.load %arg10[%c0_7, %c0_8] : memref<1x8xf32, #tpu.memory_space<vmem>>, vector<1x8xf32>
    %cst_9 = arith.constant dense<0.000000e+00> : vector<1x8xf32>
    %12 = tpu.matmul %11, %10, %cst_9 {dimension_numbers = #tpu.dot_dimension_numbers<[1], [1], [0], [0], [0, 0, 1, 0], [], []>} : vector<1x8xf32>, vector<8x8xf32>, vector<1x8xf32> -> vector<1x8xf32>
    %c0_i32_10 = arith.constant 0 : i32
    %13 = arith.cmpi eq, %arg1, %c0_i32_10 : i32
    %14 = arith.extui %13 : i1 to i32
    %c0_i32_11 = arith.constant 0 : i32
    %15 = arith.cmpi ne, %14, %c0_i32_11 : i32
    scf.if %15 {
      %cst_20 = arith.constant 0.000000e+00 : f32
      %25 = vector.broadcast %cst_20 : f32 to vector<1x1x8xf32>
      %c0_21 = arith.constant 0 : index
      %c0_22 = arith.constant 0 : index
      %c0_23 = arith.constant 0 : index
      %26 = vector.load %arg12[%c0_21, %c0_22, %c0_23] : memref<1x1x8xf32, #tpu.memory_space<vmem>>, vector<1x1x8xf32>
      tpu.vector_store %arg12[%c0_21, %c0_22, %c0_23], %25 {strides = array<i32>} : memref<1x1x8xf32, #tpu.memory_space<vmem>>, vector<1x1x8xf32>,
    } else {
    }
    %c0_12 = arith.constant 0 : index
    %c0_13 = arith.constant 0 : index
    %c0_14 = arith.constant 0 : index
    %16 = vector.load %arg12[%c0_12, %c0_13, %c0_14] : memref<1x1x8xf32, #tpu.memory_space<vmem>>, vector<1x1x8xf32>
    %17 = vector.shape_cast %16 : vector<1x1x8xf32> to vector<1x8xf32>
    %18 = arith.addf %17, %12 : vector<1x8xf32>
    %c0_15 = arith.constant 0 : index
    %c0_16 = arith.constant 0 : index
    %c0_17 = arith.constant 0 : index
    %19 = vector.load %arg12[%c0_15, %c0_16, %c0_17] : memref<1x1x8xf32, #tpu.memory_space<vmem>>, vector<1x1x8xf32>
    %20 = vector.shape_cast %19 : vector<1x1x8xf32> to vector<1x8xf32>
    %21 = vector.shape_cast %18 : vector<1x8xf32> to vector<1x1x8xf32>
    tpu.vector_store %arg12[%c0_15, %c0_16, %c0_17], %21 {strides = array<i32>} : memref<1x1x8xf32, #tpu.memory_space<vmem>>, vector<1x1x8xf32>,
    %c0_i32_18 = arith.constant 0 : i32
    %22 = arith.cmpi eq, %arg1, %c0_i32_18 : i32
    %23 = arith.extui %22 : i1 to i32
    %c0_i32_19 = arith.constant 0 : i32
    %24 = arith.cmpi ne, %23, %c0_i32_19 : i32
    scf.if %24 {
      %c0_20 = arith.constant 0 : index
      %c0_21 = arith.constant 0 : index
      %c0_22 = arith.constant 0 : index
      %25 = vector.load %arg12[%c0_20, %c0_21, %c0_22] : memref<1x1x8xf32, #tpu.memory_space<vmem>>, vector<1x1x8xf32>
      %26 = vector.shape_cast %25 : vector<1x1x8xf32> to vector<1x8xf32>
      %c0_23 = arith.constant 0 : index
      %c0_24 = arith.constant 0 : index
      %27 = vector.load %arg11[%c0_23, %c0_24] : memref<1x1xf32, #tpu.memory_space<vmem>>, vector<1x1xf32>
      %28 = vector.broadcast %27 : vector<1x1xf32> to vector<1x8xf32>
      %29 = arith.addf %26, %28 : vector<1x8xf32>
      %c0_25 = arith.constant 0 : index
      %c0_26 = arith.constant 0 : index
      %c0_27 = arith.constant 0 : index
      %30 = vector.load %arg12[%c0_25, %c0_26, %c0_27] : memref<1x1x8xf32, #tpu.memory_space<vmem>>, vector<1x1x8xf32>
      %31 = vector.shape_cast %30 : vector<1x1x8xf32> to vector<1x8xf32>
      %32 = vector.shape_cast %29 : vector<1x8xf32> to vector<1x1x8xf32>
      tpu.vector_store %arg12[%c0_25, %c0_26, %c0_27], %32 {strides = array<i32>} : memref<1x1x8xf32, #tpu.memory_space<vmem>>, vector<1x1x8xf32>,
    } else {
    }
    return
  }
  func.func @transform_0(%arg0: i32, %arg1: i32) -> (i32, i32) {
    %c0_i32 = arith.constant 0 : i32
    %c0_i32_0 = arith.constant 0 : i32
    return %arg0, %c0_i32 : i32, i32
  }
  func.func @transform_1(%arg0: i32, %arg1: i32) -> (i32, i32, i32) {
    %c0_i32 = arith.constant 0 : i32
    %c0_i32_0 = arith.constant 0 : i32
    %c0_i32_1 = arith.constant 0 : i32
    %c0_i32_2 = arith.constant 0 : i32
    return %c0_i32, %c0_i32_0, %c0_i32_1 : i32, i32, i32
  }
  func.func @transform_2(%arg0: i32, %arg1: i32) -> (i32, i32, i32) {
    %c0_i32 = arith.constant 0 : i32
    %c0_i32_0 = arith.constant 0 : i32
    %c0_i32_1 = arith.constant 0 : i32
    %c0_i32_2 = arith.constant 0 : i32
    return %c0_i32, %c0_i32_0, %c0_i32_1 : i32, i32, i32
  }
  func.func @transform_3(%arg0: i32, %arg1: i32) -> (i32, i32, i32) {
    %c0_i32 = arith.constant 0 : i32
    %c0_i32_0 = arith.constant 0 : i32
    %c0_i32_1 = arith.constant 0 : i32
    %c0_i32_2 = arith.constant 0 : i32
    return %c0_i32, %c0_i32_0, %c0_i32_1 : i32, i32, i32
  }
  func.func @transform_4(%arg0: i32, %arg1: i32) -> (i32, i32, i32) {
    %c0_i32 = arith.constant 0 : i32
    %c0_i32_0 = arith.constant 0 : i32
    %c0_i32_1 = arith.constant 0 : i32
    %c0_i32_2 = arith.constant 0 : i32
    return %c0_i32, %c0_i32_0, %c0_i32_1 : i32, i32, i32
  }
  func.func @transform_5(%arg0: i32, %arg1: i32) -> (i32, i32) {
    %c0_i32 = arith.constant 0 : i32
    %c0_i32_0 = arith.constant 0 : i32
    %c0_i32_1 = arith.constant 0 : i32
    return %c0_i32, %c0_i32_0 : i32, i32
  }
  func.func @transform_6(%arg0: i32, %arg1: i32) -> (i32, i32) {
    %c0_i32 = arith.constant 0 : i32
    %c0_i32_0 = arith.constant 0 : i32
    return %c0_i32, %arg1 : i32, i32
  }
  func.func @transform_7(%arg0: i32, %arg1: i32) -> (i32, i32) {
    %c0_i32 = arith.constant 0 : i32
    %c0_i32_0 = arith.constant 0 : i32
    return %c0_i32, %arg1 : i32, i32
  }
  func.func @transform_8(%arg0: i32, %arg1: i32) -> (i32, i32) {
    %c0_i32 = arith.constant 0 : i32
    %c0_i32_0 = arith.constant 0 : i32
    return %c0_i32, %arg1 : i32, i32
  }
  func.func @transform_9(%arg0: i32, %arg1: i32) -> (i32, i32) {
    %c0_i32 = arith.constant 0 : i32
    %c0_i32_0 = arith.constant 0 : i32
    %c0_i32_1 = arith.constant 0 : i32
    return %c0_i32, %c0_i32_0 : i32, i32
  }
  func.func @transform_10(%arg0: i32, %arg1: i32) -> (i32, i32, i32) {
    %c0_i32 = arith.constant 0 : i32
    %c0_i32_0 = arith.constant 0 : i32
    %c0_i32_1 = arith.constant 0 : i32
    return %arg0, %c0_i32, %c0_i32_0 : i32, i32, i32
  }
}

</mosaic_0001>

<bundles_post_ra>
// kernel: tpu_custom_call.1
= control target key start
LH: loop header
LB: loop body
LE: loop exit
PB: predicated region body
PF: predicated region fallthrough
CT: control target
= control target key end

     0   :  { %s1169_s0 = inlined_call_operand.vmem [shape: f32[16,4], index: 0, kind: input, shape index: {}]   ;;  %s1170_s1 = inlined_call_operand.vmem [shape: f32[1,4,1], index: 1, kind: input, shape index: {}]   ;;  %s1171_s2 = inlined_call_operand.vmem [shape: f32[1,4,1], index: 2, kind: input, shape index: {}]   ;;  %s1172_s3 = inlined_call_operand.vmem [shape: f32[1,4,1], index: 3, kind: input, shape index: {}]   ;;  %s1173_s4 = inlined_call_operand.vmem [shape: f32[1,1,4], index: 4, kind: input, shape index: {}]   ;;  %s1174_s5 = inlined_call_operand.vmem [shape: f32[1,4], index: 5, kind: input, shape index: {}]   ;;  %s1175_s6 = inlined_call_operand.vmem [shape: f32[4,8], index: 6, kind: input, shape index: {}]   ;;  %s1176_s7 = inlined_call_operand.vmem [shape: f32[1,8], index: 7, kind: input, shape index: {}]   ;;  %s1177_s8 = inlined_call_operand.vmem [shape: f32[1,8], index: 8, kind: input, shape index: {}]   ;;  %s1178_s9 = inlined_call_operand.<no memory space> [shape: f32[1,1], index: 9, kind: input, shape index: {}]   ;;  %s1179_s10 = inlined_call_operand.hbm [shape: f32[2,1,8], index: 10, kind: output, shape index: {}]  }
   0x1   :  { %v15_v0 = vstv %s1178_s9 }
   0x2   :  { %16 = vst [vmem:[#allocation3] sm:$0x1] %v15_v0 }
   0x3   :  { %17 = vsyncpa [#allocation5], 0 }
   0x4   :  { %19 = vsyncpa [#allocation5 + $0x1], 0  ;;  %s1028_s15 = smov 0   ;;  %s1030_s16 = smov 0  }
   0x5   :  { %s1032_s17 = smov 0   ;;  %s1034_s18 = smov 0  }
   0x6   :  { %s1036_s19 = smov 0   ;;  %s1038_s20 = smov 0  }
   0x7 LB: > { %s797_s9 = sadd.s32 4294967295, %s966_s20   ;;  %s798_s21 = sadd.s32 4294967294, %s966_s20   ;;  %s966_s20 = sphi %s1038_s20, %s25_s20   ;;  %s962_s19 = sphi %s1036_s19, %s1186_s19   ;;  %s958_s18 = sphi %s1034_s18, %s1185_s18   ;;  %s954_s17 = sphi %s1032_s17, %s1184_s17   ;;  %s950_s16 = sphi %s1030_s16, %s1183_s16   ;;  %s946_s15 = sphi %s1028_s15, %s1182_s15  }
   0x8   : > { %s37_s22 = sadd.s32 1, %s962_s19  ;;  %s274_s23 = sadd.s32 1, %s954_s17 }
   0x9   : > { %p39_p0 = scmp.ge.s32.totalorder %s37_s22, 2  ;;  %p284_p1 = scmp.ne.s32.totalorder %s954_s17, %s950_s16 }
   0xa   : > { %p285_p2 = scmp.eq.s32.totalorder %s797_s9, 1  ;;  %p290_p3 = scmp.ne.s32.totalorder %s950_s16, %s946_s15 }
   0xb   : > { %s1188_s22 = smov (%p39_p0, %s37_s22), 0  ;;  %p291_p5 = scmp.eq.s32.totalorder %s798_s21, 1 }
   0xc   : > { %p1068_p4 = por %p285_p2, %p284_p1  ;;  %s271_s25 = ssub.s32 %s962_s19, %s1188_s22 }
   0xd   : > { %p804_p6 = scmp.ge.s32.totalorder %s966_s20, 1  ;;  %p272_p7 = scmp.eq.s32.totalorder %s271_s25, 0 }
   0xe   : > { %p1075_p8 = por %p291_p5, %p290_p3  ;;  %p353_p9 = scmp.lt.s32.totalorder %s966_s20, 3 }
   0xf   : > { %s1081_s27 = scalar_select %p272_p7, %s954_s17, %s274_s23  }
  0x10   : > { %p354_p10 = pnand %p804_p6, %p353_p9 }
  0x11   : > { %p399_p11 = scmp.lt.s32.totalorder (!%p354_p10), %s958_s18, 1  ;;  %s397_s25 = sand.u32 (!%p354_p10), 1, %s950_s16  }
  0x12   : > { %357 = sbr.rel (%p354_p10) target bundleno = 971 (0x3cb), region = 60  ;;  %s398_s28 = scalar_lea.vmem (!%p354_p10), [#allocation4], %s397_s25 }
  0x13   : > { %s691_s11 = scalar_lea.hbm (!%p354_p10), %s1179_s10, %s958_s18  ;;  %s683_s14 = scalar_lea.sflag (!%p354_p10), [#allocation5], %s397_s25 }
  0x17   : > { %vm427_vm0 = vcmask 1043456   ;;  %v451_v1 = vld [vmem:[%s1171_s2] sm:$0xf]  ;;  %s400_s12 = scalar_select %p399_p11, %s958_s18, 1  ;;  %vm423_vm1 = vcmask 31744   ;;  %vm499_vm2 = vcmask 7168   ;;  %v418_v7 = vlaneseq }
  0x18   : > { %808 = vmatpush.msk.msra.mxu1 %vm427_vm0, %v451_v1  ;;  %v422_v2 = vld [vmem:[%s1170_s1] sm:$0xf]  ;;  %v968_v9 = vmov 0.0   ;;  %vm526_vm4 = vcmask 64512   ;;  %vm565_vm5 = vcmask 1040384   ;;  %v969_v33 = vmov 0  }
  0x19   : > { %806 = vmatpush.msk.msra.mxu0 %vm427_vm0, %v422_v2  ;;  %s805_s13 = sshll.u32 %s400_s12, 3  ;;  %v475_v4 = vld [vmem:[%s1172_s3] sm:$0xf]  ;;  %v419_v8 = vand.u32 127, %v418_v7  ;;  %v673_v32 = vld [vmem:[#allocation3] sm:$0x1]  ;;  %880 = vset.pattern.permute.xlu1 %v969_v33 }
  0x1a   : > { %s402_s21 = scalar_lea.vmem %s1169_s0, %s805_s13  ;;  %810 = vmatpush.msk.msra.mxu2 %vm427_vm0, %v475_v4  ;;  %v561_v20 = vld [vmem:[%s1173_s4] sm:$0x1]  ;;  %881 = vset.pattern.permute.xlu0 %v969_v33  ;;  %vm663_vm6 = vcmask 57344   ;;  %s693_s12 = sshll.u32 %s398_s28, 4  ;;  %s694_s12 = int_to_ptr.vmem [resolvable:$true] %s693_s12 }
  0x1b   : > { %v417_v3 = vld [vmem:[%s402_s21] sm:$0xff]  ;;  %vm420_vm3 = vcmp.eq.s32.totalorder %v419_v8, 0  ;;  %815 = vmatpush.msk.msrb.mxu1 %vm565_vm5, %v561_v20  ;;  %676 = vperm.xlu1 %880, %v673_v32   ;;  %664 = vst.msk [vmem:[%s398_s28] sm:$0x1] %vm663_vm6, %v968_v9  ;;  %s695_s13 = sshll.u32 %s691_s11, 4  ;;  %s908_s18 = scalar_lea.hbm %s1179_s10, 2  ;;  %s696_s13 = int_to_ptr.hbm [resolvable:$true] %s695_s13 }
  0x1c   : > { %809 = vmatmul.msk.f32.vlgmr.msra.gmra.mxu1 %vm423_vm1, %v417_v3  ;;  %807 = vmatmul.msk.f32.vlgmr.msra.gmra.mxu0 %vm423_vm1, %v417_v3  ;;  %v421_v10 = vsel %vm420_vm3, -1e+30, %v968_v9  ;;  %v598_v25 = vld [vmem:[%s1175_s6] sm:$0xf]  ;;  %v589_v26 = vmul.f32 2.0, %v417_v3  ;;  %s902_s9 = sshra.s32 %s696_s13, 4  ;;  %s903_s9 = int_to_ptr.hbm [resolvable:$true] %s902_s9 }
  0x1d   : > { %811 = vmatmul.msk.f32.vlgmr.msra.gmra.mxu2 %vm423_vm1, %v417_v3  ;;  %v882_v27 = vld [vmem:[%s1174_s5] ss:$0 sm:$0xff]  ;;  %s904_s21 = scalar_lea.hbm %s903_s9, 1  ;;  %p909_p1 = scmp.lt.s32.totalorder %s903_s9, %s1179_s10 }
  0x1e   : > { %817 = vmatpush.msk.msrb.mxu2 %vm427_vm0, %v598_v25  ;;  %v883_v34 = vld [vmem:[%s1176_s7] ss:$0 sm:$0xff]  ;;  %p905_p12 = scmp.ne.s32.totalorder %s903_s9, %s904_s21  ;;  %p910_p2 = scmp.lt.s32.totalorder %s908_s18, %s904_s21 }
  0x1f   : > { %v632_v38 = vld [vmem:[%s1177_s8] sm:$0x1] }
  0x20   : > { %p906_p13 = pnand %p905_p12, %p1068_p4  ;;  %p911_p3 = por %p910_p2, %p909_p1 }
  0x22   : > { %v665_v39 = vld [vmem:[%s398_s28] sm:$0x1]  ;;  %p907_p0 = pneg %p906_p13 }
  0x24   : > { %p912_p5 = pnand %p911_p3, %p907_p0 }
  0x8d   : > { %v677_v42 = vpop.permute.xlu1 %676 }
  0x8e   : > { %v679_v43 = vperm.slane %v677_v42, 0 }
  0x99   : > { %v472_v5 = vpop.f32.mrf.mxu1  ;;  %v448_v6 = vpop.f32.mrf.mxu0 }
  0x9a   : > { %812 = vmatpush.xpose.msk.msra.mxu3 %vm499_vm2, %v472_v5 }
  0x9d   : > { %813 = vmatmul.msk.f32.vlgmr.msra.gmra.mxu3 %vm499_vm2, %v448_v6 }
  0xa0   : > { %v496_v14 = vpop.f32.mrf.mxu2 }
  0xa1   : > { %554 = vmatpush.msrb.mxu0 %v496_v14 }
 0x120   : > { %v523_v11 = vpop.f32.mrf.mxu3 }
 0x121   : > { %v524_v12 = vadd.f32 %v523_v11, %v421_v10 }
 0x123   : > { %v527_v13 = vsel %vm526_vm4, %v524_v12, -inf }
 0x124   : > { %528 = vmax.xlane.f32.xlu0 %v527_v13 }
 0x197   : > { %v529_v15 = vpop.xlane.xlu0 %528 }
 0x198   : > { %v530_v16 = vsub.f32 %v524_v12, %v529_v15 }
 0x19a   : > { %v531_v17 = vmul.f32 1.442695, %v530_v16 }
 0x19c   : > { %884 = vpow2.f32 %v531_v17 }
 0x1a2   : > { %v885_v18 = vpop.eup %884 }
 0x1a3   : > { %814 = vmatmul.msk.f32.vlgmr.msrb.gmra.mxu0 %vm526_vm4, %v885_v18  ;;  %v533_v19 = vsel %vm526_vm4, %v885_v18, 0.0 }
 0x1a4   : > { %534 = vadd.xlane.f32.xlu0 %v533_v19 }
 0x217   : > { %v535_v21 = vpop.xlane.xlu0 %534 }
 0x218   : > { %886 = vrcp.f32 %v535_v21 }
 0x21e   : > { %v887_v22 = vpop.eup %886 }
 0x220   : > { %v556_v23 = vpop.f32.mrf.mxu0 }
 0x221   : > { %v560_v24 = vmul.f32 %v887_v22, %v556_v23 }
 0x223   : > { %816 = vmatmul.msk.f32.vlgmr.msrb.gmra.mxu1 %vm499_vm2, %v560_v24 }
 0x2a0   : > { %v586_v28 = vpop.f32.mrf.mxu1 }
 0x2a1   : > { %v590_v29 = vadd.f32 %v589_v26, %v586_v28 }
 0x2a3   : > { %v595_v30 = vadd.f32 %v882_v27, %v590_v29 }
 0x2a5   : > { %596 = vst.msk [vmem:[#allocation2] sm:$0xff] %vm423_vm1, %v595_v30 }
 0x2ac   : > { %v597_v31 = vld [vmem:[#allocation2] sm:$0xff] }
 0x2ad   : > { %818 = vmatmul.msk.f32.vlgmr.msrb.gmra.mxu2 %vm423_vm1, %v597_v31 }
 0x330   : > { %v628_v35 = vpop.f32.mrf.mxu2 }
 0x331   : > { %v629_v36 = vadd.f32 %v883_v34, %v628_v35 }
 0x333   : > { %v631_v37 = vmax.f32 %v629_v36, 0.0 }
 0x335   : > { %819 = vmatpush.xpose.msk.msrb.mxu3 %vm526_vm4, %v631_v37 }
 0x338   : > { %820 = vmatmul.msk.f32.vlgmr.msrb.gmra.mxu3 %vm526_vm4, %v632_v38 }
 0x3bb   : > { %v657_v40 = vpop.f32.mrf.mxu3 }
 0x3bc   : > { %v666_v41 = vadd.f32 %v665_v39, %v657_v40 }
 0x3be   : > { %668 = vst.msk [vmem:[%s398_s28] sm:$0x1] %vm663_vm6, %v666_v41 }
 0x3c5   : > { %v672_v44 = vld [vmem:[%s398_s28] sm:$0x1] }
 0x3c6   : > { %v680_v45 = vadd.f32 %v679_v43, %v672_v44 }
 0x3c8   : > { %681 = vst.msk [vmem:[%s398_s28] sm:$0x1] %vm663_vm6, %v680_v45 }
 0x3c9   : > { %915 = shalt.err (!%p912_p5)
}
 0x3ca   : > { %823 = dma.vmem_to_hbm [thread:$0]  (%p1068_p4), %s694_s12, 16, %s696_s13, %s683_s14  }
 0x3cb PF: > { %p829_p6 = scmp.ge.s32.totalorder %s966_s20, 2  ;;  %s707_s25 = sand.u32 1, %s946_s15  }
 0x3cc   : > { %s708_s28 = scalar_lea.sflag [#allocation5], %s707_s25 }
 0x3cd   : > { %p826_p7 = pnand %p829_p6, %p1075_p8 }
 0x3cf   : > { %p827_p9 = pneg %p826_p7 }
 0x3d1   : > { %941 = dma.done.wait (%p827_p9), %s708_s28, 16  }
 0x3d2   : > { %943 = vsyncadd (%p827_p9), %s708_s28, 4294967280  ;;  %s25_s20 = sadd.s32 1, %s966_s20   ;;  %s1182_s15 = smov %s950_s16 }
 0x3d3   : > { %p22_p10 = scmp.ge.s32.totalorder %s25_s20, 4   ;;  %s1183_s16 = smov %s954_s17 }
 0x3d4   : > { %s1184_s17 = smov %s1081_s27  ;;  %s1185_s18 = smov %s962_s19 }
 0x3d5   : > { %s1186_s19 = smov %s1188_s22  ;;  %24 = sbr.rel (!%p22_p10) target bundleno = 7 (0x7), region = 116 }
 0x3da   :  { %713 = vsyncpa [#allocation5], 1 }
 0x3db   :  { %715 = vsyncpa [#allocation5 + $0x1], 1 }

</bundles_post_ra>
